<compile_context>
chip_gen: v7x
topology: tpu7x:2x2x1
jax: 0.10.0
libtpu: 0.0.40
codegen_flags: <defaults>
</compile_context>

<pallas_src>
import functools

import jax
import jax.numpy as jnp
from jax import lax
from jax.experimental import pallas as pl
from jax.experimental.pallas import tpu as pltpu


# ----------------------------- Pallas kernel -------------------------------------

def _rel_pos_kernel(q_ref, e_ref, o_ref, *, pad_length):
    """Fused per-(batch, head) kernel: logits matmul + length mask + rel->abs skew.

    q_ref : (1, 1, L, D) bf16   queries for this (b, h)
    e_ref : (1, D, M)    bf16   per-head relative embeddings, pre-transposed (M == L)
    o_ref : (1, 1, L, L) f32    absolute-indexed positional logits (final layout)
    """
    q = q_ref[0, 0, :, :]                 # (L, D) bf16
    e = e_ref[0, :, :]                    # (D, M) bf16
    s = jnp.dot(q, e, preferred_element_type=jnp.float32)    # (L, M) f32 on the MXU

    L, M = s.shape
    assert M == L, "masked (causal) variant requires M == length"

    # length > max_relative_pos mask (pad_length is a trace-time Python int):
    # subtract 1e8 from the first pad_length relative-position columns.
    if pad_length > 0:
        col_m = lax.broadcasted_iota(jnp.int32, (L, M), 1)
        s = jnp.where(col_m < pad_length, s - jnp.float32(1e8), s)

    # ---- relative -> absolute indexing, fused (PyTorch pad/transpose/view/slice) ----
    #   out[i, j] = s[i,   M-1-(i-j)]   for j <= i
    #             = 0                   for j == i+1   (zero column from F.pad(x, (1, 0)))
    #             = s[i+1, (j-i)-2]     for j >= i+2   (wrap-around rows, kept bit-exact)
    row = lax.broadcasted_iota(jnp.int32, (L, L), 0)
    col = lax.broadcasted_iota(jnp.int32, (L, L), 1)

    # One-row up-shift of s expressed as a tiny constant matmul (guaranteed to lower);
    # s_next[i, :] = s[i+1, :]  (last row never selected below).
    shift_up = (col == row + 1).astype(jnp.float32)           # ones on the superdiagonal
    s_next = jnp.dot(shift_up, s, preferred_element_type=jnp.float32)

    out = jnp.zeros((L, L), jnp.float32)
    # Lower triangle incl. main diagonal: j = i - k comes from column M-1-k of s.
    for k in range(L):
        src = jnp.broadcast_to(s[:, M - 1 - k:M - k], (L, L))
        out = jnp.where(col == row - k, src, out)
    # Strict upper triangle beyond the zero superdiagonal: j = i + d from column d-2 of s_next.
    for d in range(2, L):
        src = jnp.broadcast_to(s_next[:, d - 2:d - 1], (L, L))
        out = jnp.where(col == row + d, src, out)
    # j == i + 1 stays exactly 0.

    o_ref[0, 0, :, :] = out


def _positional_logits_pallas(q_bhld, e_hdm, *, pad_length):
    """q: (B, H, L, D) bf16, e: (H, D, M) bf16 -> (B, H, L, L) f32 (skew already applied)."""
    B, H, L, D = q_bhld.shape
    M = e_hdm.shape[-1]
    assert M == L

    kernel = functools.partial(_rel_pos_kernel, pad_length=pad_length)

    # VMEM budget: double-buffered in/out blocks + f32 intermediates, clamped to a
    # safe range (raises v5e's 16 MiB default; well under every generation's physical).
    block_bytes = 2 * (L * D * 2 + D * M * 2 + L * L * 4) + 8 * L * L * 4
    vmem_limit = int(min(max(4 * block_bytes, 8 * 1024 * 1024), 32 * 1024 * 1024))

    return pl.pallas_call(
        kernel,
        out_shape=jax.ShapeDtypeStruct((B, H, L, L), jnp.float32),
        grid=(B, H),
        in_specs=[
            pl.BlockSpec((1, 1, L, D), lambda b, h: (b, h, 0, 0)),
            pl.BlockSpec((1, D, M), lambda b, h: (h, 0, 0)),
        ],
        out_specs=pl.BlockSpec((1, 1, L, L), lambda b, h: (b, h, 0, 0)),
        compiler_params=pltpu.CompilerParams(
            # Every (b, h) tile is independent -> shard across v7x's 2 TensorCores.
            dimension_semantics=("parallel", "parallel"),
            vmem_limit_bytes=vmem_limit,
        ),
    )(q_bhld, e_hdm)


# ------------------------------ JAX glue ------------------------------------------

def get_embeddings_for_query(embeddings, length, max_relative_pos):
    """Masked (unmasked=False) variant: (H, num_emb, D, 1) -> (H, length, D, 1)."""
    pad_length = max(length - max_relative_pos, 0)
    start_pos = max(max_relative_pos - length, 0)
    padded = jnp.pad(embeddings, ((0, 0), (pad_length, 0), (0, 0), (0, 0)))
    return padded[:, start_pos:start_pos + length]


def relative_to_absolute_indexing_ref(x):
    """Pure-JAX reference of the masked rel->abs skew (for testing only)."""
    L, BH, M = x.shape
    x = jnp.pad(x, ((0, 0), (0, 0), (1, 0)))
    x = jnp.transpose(x, (1, 0, 2))
    x = x.reshape(BH, L + 1, L)
    return x[:, 1:, :]


@functools.partial(jax.jit, static_argnames=("max_relative_pos", "num_heads"))
def learned_rel_pos_forward(embeddings, query, *, max_relative_pos, num_heads):
    L, BH, D = query.shape
    H = num_heads
    B = BH // H
    assert B * H == BH

    used = get_embeddings_for_query(embeddings, L, max_relative_pos)[..., 0]   # (H, M=L, D)
    e_hdm = jnp.transpose(used, (0, 2, 1)).astype(jnp.bfloat16)                # (H, D, M), tiny

    # Layout contract: the B*H axis of `query` is (batch major, head minor), exactly
    # like PyTorch's query.view(L, -1, H, D). The transpose to (B, H, L, D) is what
    # lets the kernel consume per-(b, h) (L, D) blocks and write the final skewed
    # output directly; the bf16 cast is fused into this same transpose op (single
    # pass over the query, no standalone cast pass).
    q_bhld = jnp.transpose(query.reshape(L, B, H, D), (1, 2, 0, 3)).astype(jnp.bfloat16)

    pad_length = max(L - max_relative_pos, 0)
    out = _positional_logits_pallas(q_bhld, e_hdm, pad_length=pad_length)      # (B, H, L, L) f32
    return out.reshape(B * H, L, L)                                            # pure reshape


class LearnedRelativePositionalEmbeddingPallas:
    """unmasked=False, heads_share_embeddings=False, add_to_values=False."""

    def __init__(self, max_relative_pos, num_heads, embedding_dim, key):
        self.max_relative_pos = max_relative_pos
        self.num_heads = num_heads
        self.embedding_dim = embedding_dim
        num_embeddings = max_relative_pos
        initial_stddev = embedding_dim ** (-0.5)
        self.embeddings = initial_stddev * jax.random.normal(
            key, (num_heads, num_embeddings, embedding_dim, 1), dtype=jnp.float32)

    def __call__(self, query):
        positional_logits = learned_rel_pos_forward(
            self.embeddings, query,
            max_relative_pos=self.max_relative_pos, num_heads=self.num_heads)
        values_embeddings = None   # add_to_values=False
        return positional_logits, values_embeddings


# ------------------------------ reference (pure JAX) -------------------------------

def _reference_forward(embeddings, query, max_relative_pos, num_heads, cast_bf16):
    L, BH, D = query.shape
    B = BH // num_heads
    used = get_embeddings_for_query(embeddings, L, max_relative_pos)[..., 0]   # (H, M, D)
    q = query.reshape(L, B, num_heads, D)
    if cast_bf16:
        q = q.astype(jnp.bfloat16)
        used = used.astype(jnp.bfloat16)
    logits = jnp.einsum('lbhd,hmd->lbhm', q, used,
                        preferred_element_type=jnp.float32)
    logits = logits.reshape(L, B * num_heads, logits.shape[-1])
    pad_length = max(L - max_relative_pos, 0)
    if pad_length > 0:
        colm = jnp.arange(logits.shape[-1])
        logits = jnp.where(colm[None, None, :] < pad_length, logits - 1e8, logits)
    return relative_to_absolute_indexing_ref(logits)


# ------------------------------------ main -----------------------------------------

if __name__ == "__main__":
    max_relative_pos = 8
    num_heads = 4
    embedding_dim = 32
    L = 16        # > max_relative_pos so the additive mask path is exercised
    B = 2         # batch

    key = jax.random.PRNGKey(0)
    k_emb, k_q = jax.random.split(key)

    module = LearnedRelativePositionalEmbeddingPallas(
        max_relative_pos, num_heads, embedding_dim, k_emb)

    query = jax.random.normal(k_q, (L, B * num_heads, embedding_dim),
                              dtype=jnp.float32)

    pos_logits, values_emb = module(query)
    pos_logits = jax.block_until_ready(pos_logits)

    assert pos_logits.shape == (B * num_heads, L, L)
    assert values_emb is None

    ref_bf16 = _reference_forward(module.embeddings, query, max_relative_pos,
                                  num_heads, cast_bf16=True)
    ref_f32 = _reference_forward(module.embeddings, query, max_relative_pos,
                                 num_heads, cast_bf16=False)

    # Tight check against a reference using the same bf16-in / f32-accum numerics.
    assert jnp.allclose(pos_logits, ref_bf16, atol=2e-3, rtol=1e-6), \
        float(jnp.max(jnp.abs(pos_logits - ref_bf16)))

    # Compare unmasked entries against the full-f32 module semantics (excluding the
    # -1e8-masked entries so rtol cannot hide real errors there).
    unmasked = ref_f32 > -1e6
    err = jnp.max(jnp.abs(jnp.where(unmasked, pos_logits - ref_f32, 0.0)))
    assert float(err) < 5e-2, float(err)
    # Masked entries must still carry the -1e8 offset.
    assert bool(jnp.all(jnp.where(unmasked, True, pos_logits < -1e6)))

    print("KERNEL_OK")
</pallas_src>

<mosaic_0001>
module attributes {stable_mosaic.version = 11 : i64} {
  func.func @_rel_pos_kernel(%arg0: i32, %arg1: i32, %arg2: memref<1x1x16x32xbf16, #tpu.memory_space<vmem>>, %arg3: memref<1x32x16xbf16, #tpu.memory_space<vmem>>, %arg4: memref<1x1x16x16xf32, #tpu.memory_space<vmem>>) attributes {dimension_semantics = [#tpu.dimension_semantics<parallel>, #tpu.dimension_semantics<parallel>], iteration_bounds = array<i64: 2, 4>, scalar_prefetch = 0 : i64, scratch_operands = 0 : i64, tpu.core_type = #tpu.core_type<tc>, window_params = [{transform_indices = @transform_0, window_bounds = array<i64: 1, 1, 16, 32>}, {transform_indices = @transform_1, window_bounds = array<i64: 1, 32, 16>}, {transform_indices = @transform_2, window_bounds = array<i64: 1, 1, 16, 16>}]} {
    %c0 = arith.constant 0 : index
    %c0_0 = arith.constant 0 : index
    %c0_1 = arith.constant 0 : index
    %c0_2 = arith.constant 0 : index
    %0 = vector.load %arg2[%c0, %c0_0, %c0_1, %c0_2] : memref<1x1x16x32xbf16, #tpu.memory_space<vmem>>, vector<1x1x16x32xbf16>
    %1 = vector.shape_cast %0 : vector<1x1x16x32xbf16> to vector<16x32xbf16>
    %c0_3 = arith.constant 0 : index
    %c0_4 = arith.constant 0 : index
    %c0_5 = arith.constant 0 : index
    %2 = vector.load %arg3[%c0_3, %c0_4, %c0_5] : memref<1x32x16xbf16, #tpu.memory_space<vmem>>, vector<1x32x16xbf16>
    %3 = vector.shape_cast %2 : vector<1x32x16xbf16> to vector<32x16xbf16>
    %cst = arith.constant dense<0.000000e+00> : vector<16x16xf32>
    %4 = tpu.matmul %1, %3, %cst {dimension_numbers = #tpu.dot_dimension_numbers<[1], [0], [0], [1], [0, 0, 1, 1], [], []>} : vector<16x32xbf16>, vector<32x16xbf16>, vector<16x16xf32> -> vector<16x16xf32>
    %5 = tpu.iota {dimensions = array<i32: 1>} : vector<16x16xi32>
    %c8_i32 = arith.constant 8 : i32
    %6 = vector.broadcast %c8_i32 : i32 to vector<16x16xi32>
    %7 = arith.cmpi slt, %5, %6 : vector<16x16xi32>
    %cst_6 = arith.constant 1.000000e+08 : f32
    %8 = vector.broadcast %cst_6 : f32 to vector<16x16xf32>
    %9 = arith.subf %4, %8 : vector<16x16xf32>
    %10 = arith.select %7, %9, %4 : vector<16x16xi1>, vector<16x16xf32>
    %11 = tpu.iota {dimensions = array<i32: 0>} : vector<16x16xi32>
    %12 = tpu.iota {dimensions = array<i32: 1>} : vector<16x16xi32>
    %c1_i32 = arith.constant 1 : i32
    %13 = vector.broadcast %c1_i32 : i32 to vector<16x16xi32>
    %14 = arith.addi %11, %13 : vector<16x16xi32>
    %15 = arith.cmpi eq, %12, %14 : vector<16x16xi32>
    %16 = arith.extui %15 : vector<16x16xi1> to vector<16x16xi32>
    %17 = arith.sitofp %16 : vector<16x16xi32> to vector<16x16xf32>
    %cst_7 = arith.constant dense<0.000000e+00> : vector<16x16xf32>
    %18 = tpu.matmul %17, %10, %cst_7 {dimension_numbers = #tpu.dot_dimension_numbers<[1], [0], [0], [1], [0, 0, 1, 1], [], []>} : vector<16x16xf32>, vector<16x16xf32>, vector<16x16xf32> -> vector<16x16xf32>
    %cst_8 = arith.constant 0.000000e+00 : f32
    %19 = vector.broadcast %cst_8 : f32 to vector<16x16xf32>
    %20 = vector.extract_strided_slice %10 {offsets = [0, 15], sizes = [16, 1], strides = [1, 1]} : vector<16x16xf32> to vector<16x1xf32>
    %21 = vector.shape_cast %20 : vector<16x1xf32> to vector<16x1xf32>
    %22 = vector.broadcast %21 : vector<16x1xf32> to vector<16x16xf32>
    %c0_i32 = arith.constant 0 : i32
    %23 = vector.broadcast %c0_i32 : i32 to vector<16x16xi32>
    %24 = arith.subi %11, %23 : vector<16x16xi32>
    %25 = arith.cmpi eq, %12, %24 : vector<16x16xi32>
    %26 = arith.select %25, %22, %19 : vector<16x16xi1>, vector<16x16xf32>
    %27 = vector.extract_strided_slice %10 {offsets = [0, 14], sizes = [16, 1], strides = [1, 1]} : vector<16x16xf32> to vector<16x1xf32>
    %28 = vector.shape_cast %27 : vector<16x1xf32> to vector<16x1xf32>
    %29 = vector.broadcast %28 : vector<16x1xf32> to vector<16x16xf32>
    %c1_i32_9 = arith.constant 1 : i32
    %30 = vector.broadcast %c1_i32_9 : i32 to vector<16x16xi32>
    %31 = arith.subi %11, %30 : vector<16x16xi32>
    %32 = arith.cmpi eq, %12, %31 : vector<16x16xi32>
    %33 = arith.select %32, %29, %26 : vector<16x16xi1>, vector<16x16xf32>
    %34 = vector.extract_strided_slice %10 {offsets = [0, 13], sizes = [16, 1], strides = [1, 1]} : vector<16x16xf32> to vector<16x1xf32>
    %35 = vector.shape_cast %34 : vector<16x1xf32> to vector<16x1xf32>
    %36 = vector.broadcast %35 : vector<16x1xf32> to vector<16x16xf32>
    %c2_i32 = arith.constant 2 : i32
    %37 = vector.broadcast %c2_i32 : i32 to vector<16x16xi32>
    %38 = arith.subi %11, %37 : vector<16x16xi32>
    %39 = arith.cmpi eq, %12, %38 : vector<16x16xi32>
    %40 = arith.select %39, %36, %33 : vector<16x16xi1>, vector<16x16xf32>
    %41 = vector.extract_strided_slice %10 {offsets = [0, 12], sizes = [16, 1], strides = [1, 1]} : vector<16x16xf32> to vector<16x1xf32>
    %42 = vector.shape_cast %41 : vector<16x1xf32> to vector<16x1xf32>
    %43 = vector.broadcast %42 : vector<16x1xf32> to vector<16x16xf32>
    %c3_i32 = arith.constant 3 : i32
    %44 = vector.broadcast %c3_i32 : i32 to vector<16x16xi32>
    %45 = arith.subi %11, %44 : vector<16x16xi32>
    %46 = arith.cmpi eq, %12, %45 : vector<16x16xi32>
    %47 = arith.select %46, %43, %40 : vector<16x16xi1>, vector<16x16xf32>
    %48 = vector.extract_strided_slice %10 {offsets = [0, 11], sizes = [16, 1], strides = [1, 1]} : vector<16x16xf32> to vector<16x1xf32>
    %49 = vector.shape_cast %48 : vector<16x1xf32> to vector<16x1xf32>
    %50 = vector.broadcast %49 : vector<16x1xf32> to vector<16x16xf32>
    %c4_i32 = arith.constant 4 : i32
    %51 = vector.broadcast %c4_i32 : i32 to vector<16x16xi32>
    %52 = arith.subi %11, %51 : vector<16x16xi32>
    %53 = arith.cmpi eq, %12, %52 : vector<16x16xi32>
    %54 = arith.select %53, %50, %47 : vector<16x16xi1>, vector<16x16xf32>
    %55 = vector.extract_strided_slice %10 {offsets = [0, 10], sizes = [16, 1], strides = [1, 1]} : vector<16x16xf32> to vector<16x1xf32>
    %56 = vector.shape_cast %55 : vector<16x1xf32> to vector<16x1xf32>
    %57 = vector.broadcast %56 : vector<16x1xf32> to vector<16x16xf32>
    %c5_i32 = arith.constant 5 : i32
    %58 = vector.broadcast %c5_i32 : i32 to vector<16x16xi32>
    %59 = arith.subi %11, %58 : vector<16x16xi32>
    %60 = arith.cmpi eq, %12, %59 : vector<16x16xi32>
    %61 = arith.select %60, %57, %54 : vector<16x16xi1>, vector<16x16xf32>
    %62 = vector.extract_strided_slice %10 {offsets = [0, 9], sizes = [16, 1], strides = [1, 1]} : vector<16x16xf32> to vector<16x1xf32>
    %63 = vector.shape_cast %62 : vector<16x1xf32> to vector<16x1xf32>
    %64 = vector.broadcast %63 : vector<16x1xf32> to vector<16x16xf32>
    %c6_i32 = arith.constant 6 : i32
    %65 = vector.broadcast %c6_i32 : i32 to vector<16x16xi32>
    %66 = arith.subi %11, %65 : vector<16x16xi32>
    %67 = arith.cmpi eq, %12, %66 : vector<16x16xi32>
    %68 = arith.select %67, %64, %61 : vector<16x16xi1>, vector<16x16xf32>
    %69 = vector.extract_strided_slice %10 {offsets = [0, 8], sizes = [16, 1], strides = [1, 1]} : vector<16x16xf32> to vector<16x1xf32>
    %70 = vector.shape_cast %69 : vector<16x1xf32> to vector<16x1xf32>
    %71 = vector.broadcast %70 : vector<16x1xf32> to vector<16x16xf32>
    %c7_i32 = arith.constant 7 : i32
    %72 = vector.broadcast %c7_i32 : i32 to vector<16x16xi32>
    %73 = arith.subi %11, %72 : vector<16x16xi32>
    %74 = arith.cmpi eq, %12, %73 : vector<16x16xi32>
    %75 = arith.select %74, %71, %68 : vector<16x16xi1>, vector<16x16xf32>
    %76 = vector.extract_strided_slice %10 {offsets = [0, 7], sizes = [16, 1], strides = [1, 1]} : vector<16x16xf32> to vector<16x1xf32>
    %77 = vector.shape_cast %76 : vector<16x1xf32> to vector<16x1xf32>
    %78 = vector.broadcast %77 : vector<16x1xf32> to vector<16x16xf32>
    %c8_i32_10 = arith.constant 8 : i32
    %79 = vector.broadcast %c8_i32_10 : i32 to vector<16x16xi32>
    %80 = arith.subi %11, %79 : vector<16x16xi32>
    %81 = arith.cmpi eq, %12, %80 : vector<16x16xi32>
    %82 = arith.select %81, %78, %75 : vector<16x16xi1>, vector<16x16xf32>
    %83 = vector.extract_strided_slice %10 {offsets = [0, 6], sizes = [16, 1], strides = [1, 1]} : vector<16x16xf32> to vector<16x1xf32>
    %84 = vector.shape_cast %83 : vector<16x1xf32> to vector<16x1xf32>
    %85 = vector.broadcast %84 : vector<16x1xf32> to vector<16x16xf32>
    %c9_i32 = arith.constant 9 : i32
    %86 = vector.broadcast %c9_i32 : i32 to vector<16x16xi32>
    %87 = arith.subi %11, %86 : vector<16x16xi32>
    %88 = arith.cmpi eq, %12, %87 : vector<16x16xi32>
    %89 = arith.select %88, %85, %82 : vector<16x16xi1>, vector<16x16xf32>
    %90 = vector.extract_strided_slice %10 {offsets = [0, 5], sizes = [16, 1], strides = [1, 1]} : vector<16x16xf32> to vector<16x1xf32>
    %91 = vector.shape_cast %90 : vector<16x1xf32> to vector<16x1xf32>
    %92 = vector.broadcast %91 : vector<16x1xf32> to vector<16x16xf32>
    %c10_i32 = arith.constant 10 : i32
    %93 = vector.broadcast %c10_i32 : i32 to vector<16x16xi32>
    %94 = arith.subi %11, %93 : vector<16x16xi32>
    %95 = arith.cmpi eq, %12, %94 : vector<16x16xi32>
    %96 = arith.select %95, %92, %89 : vector<16x16xi1>, vector<16x16xf32>
    %97 = vector.extract_strided_slice %10 {offsets = [0, 4], sizes = [16, 1], strides = [1, 1]} : vector<16x16xf32> to vector<16x1xf32>
    %98 = vector.shape_cast %97 : vector<16x1xf32> to vector<16x1xf32>
    %99 = vector.broadcast %98 : vector<16x1xf32> to vector<16x16xf32>
    %c11_i32 = arith.constant 11 : i32
    %100 = vector.broadcast %c11_i32 : i32 to vector<16x16xi32>
    %101 = arith.subi %11, %100 : vector<16x16xi32>
    %102 = arith.cmpi eq, %12, %101 : vector<16x16xi32>
    %103 = arith.select %102, %99, %96 : vector<16x16xi1>, vector<16x16xf32>
    %104 = vector.extract_strided_slice %10 {offsets = [0, 3], sizes = [16, 1], strides = [1, 1]} : vector<16x16xf32> to vector<16x1xf32>
    %105 = vector.shape_cast %104 : vector<16x1xf32> to vector<16x1xf32>
    %106 = vector.broadcast %105 : vector<16x1xf32> to vector<16x16xf32>
    %c12_i32 = arith.constant 12 : i32
    %107 = vector.broadcast %c12_i32 : i32 to vector<16x16xi32>
    %108 = arith.subi %11, %107 : vector<16x16xi32>
    %109 = arith.cmpi eq, %12, %108 : vector<16x16xi32>
    %110 = arith.select %109, %106, %103 : vector<16x16xi1>, vector<16x16xf32>
    %111 = vector.extract_strided_slice %10 {offsets = [0, 2], sizes = [16, 1], strides = [1, 1]} : vector<16x16xf32> to vector<16x1xf32>
    %112 = vector.shape_cast %111 : vector<16x1xf32> to vector<16x1xf32>
    %113 = vector.broadcast %112 : vector<16x1xf32> to vector<16x16xf32>
    %c13_i32 = arith.constant 13 : i32
    %114 = vector.broadcast %c13_i32 : i32 to vector<16x16xi32>
    %115 = arith.subi %11, %114 : vector<16x16xi32>
    %116 = arith.cmpi eq, %12, %115 : vector<16x16xi32>
    %117 = arith.select %116, %113, %110 : vector<16x16xi1>, vector<16x16xf32>
    %118 = vector.extract_strided_slice %10 {offsets = [0, 1], sizes = [16, 1], strides = [1, 1]} : vector<16x16xf32> to vector<16x1xf32>
    %119 = vector.shape_cast %118 : vector<16x1xf32> to vector<16x1xf32>
    %120 = vector.broadcast %119 : vector<16x1xf32> to vector<16x16xf32>
    %c14_i32 = arith.constant 14 : i32
    %121 = vector.broadcast %c14_i32 : i32 to vector<16x16xi32>
    %122 = arith.subi %11, %121 : vector<16x16xi32>
    %123 = arith.cmpi eq, %12, %122 : vector<16x16xi32>
    %124 = arith.select %123, %120, %117 : vector<16x16xi1>, vector<16x16xf32>
    %125 = vector.extract_strided_slice %10 {offsets = [0, 0], sizes = [16, 1], strides = [1, 1]} : vector<16x16xf32> to vector<16x1xf32>
    %126 = vector.shape_cast %125 : vector<16x1xf32> to vector<16x1xf32>
    %127 = vector.broadcast %126 : vector<16x1xf32> to vector<16x16xf32>
    %c15_i32 = arith.constant 15 : i32
    %128 = vector.broadcast %c15_i32 : i32 to vector<16x16xi32>
    %129 = arith.subi %11, %128 : vector<16x16xi32>
    %130 = arith.cmpi eq, %12, %129 : vector<16x16xi32>
    %131 = arith.select %130, %127, %124 : vector<16x16xi1>, vector<16x16xf32>
    %132 = vector.extract_strided_slice %18 {offsets = [0, 0], sizes = [16, 1], strides = [1, 1]} : vector<16x16xf32> to vector<16x1xf32>
    %133 = vector.shape_cast %132 : vector<16x1xf32> to vector<16x1xf32>
    %134 = vector.broadcast %133 : vector<16x1xf32> to vector<16x16xf32>
    %c2_i32_11 = arith.constant 2 : i32
    %135 = vector.broadcast %c2_i32_11 : i32 to vector<16x16xi32>
    %136 = arith.addi %11, %135 : vector<16x16xi32>
    %137 = arith.cmpi eq, %12, %136 : vector<16x16xi32>
    %138 = arith.select %137, %134, %131 : vector<16x16xi1>, vector<16x16xf32>
    %139 = vector.extract_strided_slice %18 {offsets = [0, 1], sizes = [16, 1], strides = [1, 1]} : vector<16x16xf32> to vector<16x1xf32>
    %140 = vector.shape_cast %139 : vector<16x1xf32> to vector<16x1xf32>
    %141 = vector.broadcast %140 : vector<16x1xf32> to vector<16x16xf32>
    %c3_i32_12 = arith.constant 3 : i32
    %142 = vector.broadcast %c3_i32_12 : i32 to vector<16x16xi32>
    %143 = arith.addi %11, %142 : vector<16x16xi32>
    %144 = arith.cmpi eq, %12, %143 : vector<16x16xi32>
    %145 = arith.select %144, %141, %138 : vector<16x16xi1>, vector<16x16xf32>
    %146 = vector.extract_strided_slice %18 {offsets = [0, 2], sizes = [16, 1], strides = [1, 1]} : vector<16x16xf32> to vector<16x1xf32>
    %147 = vector.shape_cast %146 : vector<16x1xf32> to vector<16x1xf32>
    %148 = vector.broadcast %147 : vector<16x1xf32> to vector<16x16xf32>
    %c4_i32_13 = arith.constant 4 : i32
    %149 = vector.broadcast %c4_i32_13 : i32 to vector<16x16xi32>
    %150 = arith.addi %11, %149 : vector<16x16xi32>
    %151 = arith.cmpi eq, %12, %150 : vector<16x16xi32>
    %152 = arith.select %151, %148, %145 : vector<16x16xi1>, vector<16x16xf32>
    %153 = vector.extract_strided_slice %18 {offsets = [0, 3], sizes = [16, 1], strides = [1, 1]} : vector<16x16xf32> to vector<16x1xf32>
    %154 = vector.shape_cast %153 : vector<16x1xf32> to vector<16x1xf32>
    %155 = vector.broadcast %154 : vector<16x1xf32> to vector<16x16xf32>
    %c5_i32_14 = arith.constant 5 : i32
    %156 = vector.broadcast %c5_i32_14 : i32 to vector<16x16xi32>
    %157 = arith.addi %11, %156 : vector<16x16xi32>
    %158 = arith.cmpi eq, %12, %157 : vector<16x16xi32>
    %159 = arith.select %158, %155, %152 : vector<16x16xi1>, vector<16x16xf32>
    %160 = vector.extract_strided_slice %18 {offsets = [0, 4], sizes = [16, 1], strides = [1, 1]} : vector<16x16xf32> to vector<16x1xf32>
    %161 = vector.shape_cast %160 : vector<16x1xf32> to vector<16x1xf32>
    %162 = vector.broadcast %161 : vector<16x1xf32> to vector<16x16xf32>
    %c6_i32_15 = arith.constant 6 : i32
    %163 = vector.broadcast %c6_i32_15 : i32 to vector<16x16xi32>
    %164 = arith.addi %11, %163 : vector<16x16xi32>
    %165 = arith.cmpi eq, %12, %164 : vector<16x16xi32>
    %166 = arith.select %165, %162, %159 : vector<16x16xi1>, vector<16x16xf32>
    %167 = vector.extract_strided_slice %18 {offsets = [0, 5], sizes = [16, 1], strides = [1, 1]} : vector<16x16xf32> to vector<16x1xf32>
    %168 = vector.shape_cast %167 : vector<16x1xf32> to vector<16x1xf32>
    %169 = vector.broadcast %168 : vector<16x1xf32> to vector<16x16xf32>
    %c7_i32_16 = arith.constant 7 : i32
    %170 = vector.broadcast %c7_i32_16 : i32 to vector<16x16xi32>
    %171 = arith.addi %11, %170 : vector<16x16xi32>
    %172 = arith.cmpi eq, %12, %171 : vector<16x16xi32>
    %173 = arith.select %172, %169, %166 : vector<16x16xi1>, vector<16x16xf32>
    %174 = vector.extract_strided_slice %18 {offsets = [0, 6], sizes = [16, 1], strides = [1, 1]} : vector<16x16xf32> to vector<16x1xf32>
    %175 = vector.shape_cast %174 : vector<16x1xf32> to vector<16x1xf32>
    %176 = vector.broadcast %175 : vector<16x1xf32> to vector<16x16xf32>
    %c8_i32_17 = arith.constant 8 : i32
    %177 = vector.broadcast %c8_i32_17 : i32 to vector<16x16xi32>
    %178 = arith.addi %11, %177 : vector<16x16xi32>
    %179 = arith.cmpi eq, %12, %178 : vector<16x16xi32>
    %180 = arith.select %179, %176, %173 : vector<16x16xi1>, vector<16x16xf32>
    %181 = vector.extract_strided_slice %18 {offsets = [0, 7], sizes = [16, 1], strides = [1, 1]} : vector<16x16xf32> to vector<16x1xf32>
    %182 = vector.shape_cast %181 : vector<16x1xf32> to vector<16x1xf32>
    %183 = vector.broadcast %182 : vector<16x1xf32> to vector<16x16xf32>
    %c9_i32_18 = arith.constant 9 : i32
    %184 = vector.broadcast %c9_i32_18 : i32 to vector<16x16xi32>
    %185 = arith.addi %11, %184 : vector<16x16xi32>
    %186 = arith.cmpi eq, %12, %185 : vector<16x16xi32>
    %187 = arith.select %186, %183, %180 : vector<16x16xi1>, vector<16x16xf32>
    %188 = vector.extract_strided_slice %18 {offsets = [0, 8], sizes = [16, 1], strides = [1, 1]} : vector<16x16xf32> to vector<16x1xf32>
    %189 = vector.shape_cast %188 : vector<16x1xf32> to vector<16x1xf32>
    %190 = vector.broadcast %189 : vector<16x1xf32> to vector<16x16xf32>
    %c10_i32_19 = arith.constant 10 : i32
    %191 = vector.broadcast %c10_i32_19 : i32 to vector<16x16xi32>
    %192 = arith.addi %11, %191 : vector<16x16xi32>
    %193 = arith.cmpi eq, %12, %192 : vector<16x16xi32>
    %194 = arith.select %193, %190, %187 : vector<16x16xi1>, vector<16x16xf32>
    %195 = vector.extract_strided_slice %18 {offsets = [0, 9], sizes = [16, 1], strides = [1, 1]} : vector<16x16xf32> to vector<16x1xf32>
    %196 = vector.shape_cast %195 : vector<16x1xf32> to vector<16x1xf32>
    %197 = vector.broadcast %196 : vector<16x1xf32> to vector<16x16xf32>
    %c11_i32_20 = arith.constant 11 : i32
    %198 = vector.broadcast %c11_i32_20 : i32 to vector<16x16xi32>
    %199 = arith.addi %11, %198 : vector<16x16xi32>
    %200 = arith.cmpi eq, %12, %199 : vector<16x16xi32>
    %201 = arith.select %200, %197, %194 : vector<16x16xi1>, vector<16x16xf32>
    %202 = vector.extract_strided_slice %18 {offsets = [0, 10], sizes = [16, 1], strides = [1, 1]} : vector<16x16xf32> to vector<16x1xf32>
    %203 = vector.shape_cast %202 : vector<16x1xf32> to vector<16x1xf32>
    %204 = vector.broadcast %203 : vector<16x1xf32> to vector<16x16xf32>
    %c12_i32_21 = arith.constant 12 : i32
    %205 = vector.broadcast %c12_i32_21 : i32 to vector<16x16xi32>
    %206 = arith.addi %11, %205 : vector<16x16xi32>
    %207 = arith.cmpi eq, %12, %206 : vector<16x16xi32>
    %208 = arith.select %207, %204, %201 : vector<16x16xi1>, vector<16x16xf32>
    %209 = vector.extract_strided_slice %18 {offsets = [0, 11], sizes = [16, 1], strides = [1, 1]} : vector<16x16xf32> to vector<16x1xf32>
    %210 = vector.shape_cast %209 : vector<16x1xf32> to vector<16x1xf32>
    %211 = vector.broadcast %210 : vector<16x1xf32> to vector<16x16xf32>
    %c13_i32_22 = arith.constant 13 : i32
    %212 = vector.broadcast %c13_i32_22 : i32 to vector<16x16xi32>
    %213 = arith.addi %11, %212 : vector<16x16xi32>
    %214 = arith.cmpi eq, %12, %213 : vector<16x16xi32>
    %215 = arith.select %214, %211, %208 : vector<16x16xi1>, vector<16x16xf32>
    %216 = vector.extract_strided_slice %18 {offsets = [0, 12], sizes = [16, 1], strides = [1, 1]} : vector<16x16xf32> to vector<16x1xf32>
    %217 = vector.shape_cast %216 : vector<16x1xf32> to vector<16x1xf32>
    %218 = vector.broadcast %217 : vector<16x1xf32> to vector<16x16xf32>
    %c14_i32_23 = arith.constant 14 : i32
    %219 = vector.broadcast %c14_i32_23 : i32 to vector<16x16xi32>
    %220 = arith.addi %11, %219 : vector<16x16xi32>
    %221 = arith.cmpi eq, %12, %220 : vector<16x16xi32>
    %222 = arith.select %221, %218, %215 : vector<16x16xi1>, vector<16x16xf32>
    %223 = vector.extract_strided_slice %18 {offsets = [0, 13], sizes = [16, 1], strides = [1, 1]} : vector<16x16xf32> to vector<16x1xf32>
    %224 = vector.shape_cast %223 : vector<16x1xf32> to vector<16x1xf32>
    %225 = vector.broadcast %224 : vector<16x1xf32> to vector<16x16xf32>
    %c15_i32_24 = arith.constant 15 : i32
    %226 = vector.broadcast %c15_i32_24 : i32 to vector<16x16xi32>
    %227 = arith.addi %11, %226 : vector<16x16xi32>
    %228 = arith.cmpi eq, %12, %227 : vector<16x16xi32>
    %229 = arith.select %228, %225, %222 : vector<16x16xi1>, vector<16x16xf32>
    %c0_25 = arith.constant 0 : index
    %c0_26 = arith.constant 0 : index
    %c0_27 = arith.constant 0 : index
    %c0_28 = arith.constant 0 : index
    %230 = vector.load %arg4[%c0_25, %c0_26, %c0_27, %c0_28] : memref<1x1x16x16xf32, #tpu.memory_space<vmem>>, vector<1x1x16x16xf32>
    %231 = vector.shape_cast %230 : vector<1x1x16x16xf32> to vector<16x16xf32>
    %232 = vector.shape_cast %229 : vector<16x16xf32> to vector<1x1x16x16xf32>
    tpu.vector_store %arg4[%c0_25, %c0_26, %c0_27, %c0_28], %232 {strides = array<i32>} : memref<1x1x16x16xf32, #tpu.memory_space<vmem>>, vector<1x1x16x16xf32>,
    return
  }
  func.func @transform_0(%arg0: i32, %arg1: i32) -> (i32, i32, i32, i32) {
    %c0_i32 = arith.constant 0 : i32
    %c0_i32_0 = arith.constant 0 : i32
    %c0_i32_1 = arith.constant 0 : i32
    return %arg0, %arg1, %c0_i32, %c0_i32_0 : i32, i32, i32, i32
  }
  func.func @transform_1(%arg0: i32, %arg1: i32) -> (i32, i32, i32) {
    %c0_i32 = arith.constant 0 : i32
    %c0_i32_0 = arith.constant 0 : i32
    %c0_i32_1 = arith.constant 0 : i32
    return %arg1, %c0_i32, %c0_i32_0 : i32, i32, i32
  }
  func.func @transform_2(%arg0: i32, %arg1: i32) -> (i32, i32, i32, i32) {
    %c0_i32 = arith.constant 0 : i32
    %c0_i32_0 = arith.constant 0 : i32
    %c0_i32_1 = arith.constant 0 : i32
    return %arg0, %arg1, %c0_i32, %c0_i32_0 : i32, i32, i32, i32
  }
}

</mosaic_0001>

<bundles_post_ra>
// kernel: learned_rel_pos_forward.1
= control target key start
LH: loop header
LB: loop body
LE: loop exit
PB: predicated region body
PF: predicated region fallthrough
CT: control target
= control target key end

     0   :  { %7 = vsyncpa [#allocation3], 0  ;;  %s1629_s0 = inlined_call_operand.vmem [shape: bf16[2,4,16,32], index: 0, kind: input, shape index: {}]   ;;  %s1630_s1 = inlined_call_operand.vmem [shape: bf16[4,32,16], index: 1, kind: input, shape index: {}]   ;;  %s1631_s2 = inlined_call_operand.hbm [shape: f32[2,4,16,16], index: 2, kind: output, shape index: {}]  }
   0x1   :  { %9 = vsyncpa [#allocation3 + $0x1], 0  ;;  %s1253_s9 = smov 0   ;;  %s1255_s10 = smov 0  }
   0x2   :  { %s1257_s11 = smov 0   ;;  %s1259_s12 = smov 0  }
   0x3   :  { %s1261_s13 = smov 0   ;;  %s1263_s14 = smov 0  }
   0x4   :  { %s1265_s15 = smov 0   ;;  %s1267_s16 = smov 0  }
   0x5 LB: > { %s892_s17 = sadd.s32 4294967295, %s1215_s16   ;;  %s893_s18 = sadd.s32 4294967294, %s1215_s16   ;;  %s1215_s16 = sphi %s1267_s16, %s15_s16   ;;  %s1211_s15 = sphi %s1265_s15, %s1640_s15   ;;  %s1207_s14 = sphi %s1263_s14, %s1639_s14   ;;  %s1203_s13 = sphi %s1261_s13, %s1638_s13   ;;  %s1199_s12 = sphi %s1259_s12, %s1637_s12   ;;  %s1195_s11 = sphi %s1257_s11, %s1636_s11   ;;  %s1191_s10 = sphi %s1255_s10, %s1635_s10   ;;  %s1187_s9 = sphi %s1253_s9, %s1634_s9  }
   0x6   : > { %s24_s19 = sadd.s32 1, %s1207_s14  ;;  %s27_s20 = sadd.s32 1, %s1211_s15 }
   0x7   : > { %p25_p0 = scmp.ge.s32.totalorder %s24_s19, 4  ;;  %p100_p1 = scmp.ne.s32.totalorder %s1195_s11, %s1191_s10 }
   0x8   : > { %p101_p2 = scmp.eq.s32.totalorder %s892_s17, 7  ;;  %p106_p5 = scmp.ne.s32.totalorder %s1191_s10, %s1187_s9 }
   0x9   : > { %s1642_s19 = smov (%p25_p0, %s24_s19), 0  ;;  %s1644_s20 = smov (!%p25_p0, %s27_s20), %s1211_s15 }
   0xa   : > { %s86_s21 = ssub.s32 %s1207_s14, %s1642_s19  ;;  %p1304_p3 = por %p101_p2, %p100_p1 }
   0xb   : > { %p29_p4 = scmp.ge.s32.totalorder %s1644_s20, 2  ;;  %p107_p6 = scmp.eq.s32.totalorder %s893_s18, 7 }
   0xc   : > { %p896_p7 = scmp.ge.s32.totalorder %s1215_s16, 1  ;;  %p145_p9 = scmp.lt.s32.totalorder %s1215_s16, 9 }
   0xd   : > { %s1646_s20 = smov (%p29_p4, %s1644_s20), 0  ;;  %p1313_p8 = por %p107_p6, %p106_p5 }
   0xe   : > { %s85_s24 = ssub.s32 %s1211_s15, %s1646_s20  ;;  %s90_s25 = sadd.s32 1, %s1195_s11 }
   0xf   : > { %s87_s26 = sor.u32 %s86_s21, %s85_s24  ;;  %p146_p10 = pnand %p896_p7, %p145_p9 }
  0x10   : > { %p88_p11 = scmp.eq.s32.totalorder %s87_s26, 0  ;;  %p178_p12 = scmp.lt.s32.totalorder (!%p146_p10), %s1199_s12, 3  ;;  %v1217_v0 = vmov (!%p146_p10), 0.0   ;;  %vm1218_vm0 = vmmov (!%p146_p10), 0   ;;  %vm214_vm1 = vcmask (!%p146_p10), 261120   ;;  %v259_v4 = vlaneseq (!%p146_p10) }
  0x11   : > { %149 = sbr.rel (%p146_p10) target bundleno = 705 (0x2c1), region = 28  ;;  %p176_p13 = scmp.lt.s32.totalorder (!%p146_p10), %s1203_s13, 1  ;;  %956 = vmatprep.subr.bf16.mxu0 (!%p146_p10), %v1217_v0  ;;  %960 = vmatprep.mubr.msk.bf16.mxu0 (!%p146_p10), %vm1218_vm0, %v1217_v0  ;;  %v1219_v5 = vmov (!%p146_p10), 14   ;;  %v1220_v6 = vmov (!%p146_p10), 15   ;;  %vm277_vm3 = vcmask (!%p146_p10), 130048   ;;  %v1221_v22 = vmov (!%p146_p10), 12  }
  0x12   : > { %s1322_s27 = scalar_select %p88_p11, %s1195_s11, %s90_s25  }
  0x13   : > { %1067 = vset.pattern.permute.xlu1 (!%p146_p10), %v1219_v5  ;;  %1066 = vset.pattern.permute.xlu0 (!%p146_p10), %v1220_v6  ;;  %v1334_v7 = vshrl.u32 (!%p146_p10), %v259_v4, 7  ;;  %v1336_v8 = vand.u32 (!%p146_p10), 127, %v259_v4  ;;  %v1222_v23 = vmov (!%p146_p10), 13   ;;  %v1223_v25 = vmov (!%p146_p10), 11   ;;  %s173_s25 = sand.u32 (!%p146_p10), 1, %s1191_s10   ;;  %s943_s26 = sshll.u32 (!%p146_p10), %s1199_s12, 1 }
  0x14   : > { %v1224_v26 = vmov (!%p146_p10), 10   ;;  %v1225_v27 = vmov (!%p146_p10), 9   ;;  %v1226_v28 = vmov (!%p146_p10), 8   ;;  %v1227_v29 = vmov (!%p146_p10), 7  }
  0x15   : > { %v269_v9 = vadd.s32 (!%p146_p10), 1, %v1334_v7  ;;  %v1342_v11 = vadd.s32 (!%p146_p10), 8, %v1334_v7  ;;  %vm261_vm4 = vcmp.lt.s32.totalorder (!%p146_p10), %v1336_v8, 8  ;;  %v1228_v30 = vmov (!%p146_p10), 4  }
  0x16   : > { %v1229_v31 = vmov (!%p146_p10), 1   ;;  %v1230_v32 = vmov (!%p146_p10), 0   ;;  %v1231_v33 = vmov (!%p146_p10), 6   ;;  %v1232_v34 = vmov (!%p146_p10), 5  }
  0x17   : > { %vm271_vm2 = vcmp.eq.s32.totalorder (!%p146_p10), %v1336_v8, %v269_v9  ;;  %v270_v19 = vadd.s32 (!%p146_p10), 1, %v1342_v11  ;;  %v1233_v35 = vmov (!%p146_p10), 3   ;;  %v1234_v36 = vmov (!%p146_p10), 2  }
  0x18   : > { %s179_s28 = scalar_select %p178_p12, %s1199_s12, 3  ;;  %v909_v10 = vsel %vm271_vm2, 1.0, %v1217_v0  ;;  %v913_v37 = vadd.s32 4294967295, %v1334_v7  ;;  %vm369_vm6 = vcmp.eq.s32.totalorder %v1336_v8, %v1334_v7  ;;  %v915_v40 = vadd.s32 4294967294, %v1334_v7 }
  0x19   : > { %s177_s29 = scalar_select %p176_p13, %s1203_s13, 1  ;;  %968 = vmatprep.mubr.msk.f32.mxu1 %vm277_vm3, %v909_v10  ;;  %vm272_vm5 = vcmp.eq.s32.totalorder %v1336_v8, %v270_v19  ;;  %v917_v41 = vadd.s32 4294967293, %v1334_v7  ;;  %v919_v43 = vadd.s32 4294967292, %v1334_v7  ;;  %v921_v49 = vadd.s32 4294967291, %v1334_v7 }
  0x1a   : > { %s898_s30 = sshll.u32 %s179_s28, 1  ;;  %s948_s3 = sshll.u32 %s179_s28, 4  ;;  %v910_v24 = vsel %vm272_vm5, 1.0, %v1217_v0  ;;  %vm383_vm7 = vcmp.eq.s32.totalorder %v1336_v8, %v913_v37  ;;  %vm397_vm8 = vcmp.eq.s32.totalorder %v1336_v8, %v915_v40  ;;  %v923_v50 = vadd.s32 4294967290, %v1334_v7 }
  0x1b   : > { %s189_s6 = scalar_lea.vmem %s1630_s1, %s948_s3  ;;  %s899_s7 = sshll.u32 %s177_s29, 3  ;;  %vm411_vm9 = vcmp.eq.s32.totalorder %v1336_v8, %v917_v41  ;;  %vm425_vm10 = vcmp.eq.s32.totalorder %v1336_v8, %v919_v43  ;;  %vm439_vm11 = vcmp.eq.s32.totalorder %v1336_v8, %v921_v49  ;;  %v925_v54 = vadd.s32 4294967289, %v1334_v7 }
  0x1c   : > { %v1118_v1 = vld [vmem:[%s189_s6] sm:$0xff]   ;;  %s182_s8 = sadd.s32 %s899_s7, %s898_s30  ;;  %v1119_v2 = vld [vmem:[%s189_s6 + $0x8] sm:$0xff]   ;;  %vm453_vm12 = vcmp.eq.s32.totalorder %v1336_v8, %v923_v50  ;;  %v914_v60 = vadd.s32 4294967295, %v1342_v11  ;;  %v916_v61 = vadd.s32 4294967294, %v1342_v11  ;;  %vm370_vm14 = vcmp.eq.s32.totalorder %v1336_v8, %v1342_v11  ;;  %s944_s28 = sshll.u32 %s1203_s13, 3 }
  0x1d   : > { %s900_s17 = sshll.u32 %s182_s8, 2  ;;  %957 = vmatpush3.bf16.msra.mxu0 %v1118_v1  ;;  %vm467_vm13 = vcmp.eq.s32.totalorder %v1336_v8, %v925_v54  ;;  %v922_v9 = vadd.s32 4294967291, %v1342_v11  ;;  %v929_v19 = vadd.s32 4294967287, %v1342_v11  ;;  %v935_v43 = vadd.s32 4294967284, %v1342_v11  ;;  %s897_s29 = sshll.u32 %s173_s25, 4 }
  0x1e   : > { %s184_s24 = scalar_lea.vmem %s1629_s0, %s900_s17  ;;  %958 = vmatprep.subr.bf16.mxu0 %v1217_v0  ;;  %vm384_vm15 = vcmp.eq.s32.totalorder %v1336_v8, %v914_v60  ;;  %vm398_vm0 = vcmp.eq.s32.totalorder %v1336_v8, %v916_v61  ;;  %v918_v0 = vadd.s32 4294967293, %v1342_v11  ;;  %v591_v60 = vadd.s32 2, %v1334_v7  ;;  %s792_s12 = sadd.s32 %s944_s28, %s943_s26 }
  0x1f   : > { %v1120_v3 = vld [vmem:[%s184_s24] sm:$0xff]   ;;  %v605_v61 = vadd.s32 3, %v1334_v7  ;;  %s175_s13 = scalar_lea.vmem [#allocation2], %s897_s29  ;;  %s945_s3 = sshll.u32 %s792_s12, 7 }
  0x20   : > { %s795_s30 = sshll.u32 %s175_s13, 4  ;;  %s1572_s6 = scalar_lea.hbm %s1631_s2, %s945_s3  ;;  %s1567_s30 = int_to_ptr.vmem [resolvable:$true] %s795_s30 }
  0x21   : > { %959 = vmatpush3.bf16.msra.mxu0 %v1119_v2  ;;  %v920_v2 = vadd.s32 4294967292, %v1342_v11  ;;  %s1577_s7 = scalar_lea.sflag [#allocation3], %s173_s25  ;;  %s1121_s8 = scalar_lea.vmem %s1567_s30, 256 }
  0x22   : > { %p1122_p0 = scmp.ne.s32.totalorder %s1567_s30, %s1121_s8  ;;  %s1235_s17 = smov [#allocation2]  }
  0x23   : > { %vm426_vm2 = vcmp.eq.s32.totalorder %v1336_v8, %v920_v2  ;;  %s1125_s18 = sshll.u32 %s1235_s17, 4  ;;  %s1126_s18 = int_to_ptr.vmem [resolvable:$false] %s1125_s18 }
  0x24   : > { %961 = vmatmul.mubr.msk.bf16.vlgmr.msra.gmra.mrb[0].mxu0 %vm214_vm1, %v1120_v3  ;;  %vm412_vm1 = vcmp.eq.s32.totalorder %v1336_v8, %v918_v0  ;;  %v941_v0 = vadd.s32 4294967281, %v1342_v11  ;;  %p1123_p1 = pnand %p1122_p0, %p1304_p3  ;;  %s1127_s21 = scalar_lea.vmem %s1126_s18, 512 }
  0x25   : > { %p1128_p4 = scmp.lt.s32.totalorder %s1567_s30, %s1126_s18  ;;  %p1129_p5 = scmp.lt.s32.totalorder %s1127_s21, %s1121_s8 }
  0x26   : > { %p1124_p2 = pneg %p1123_p1 }
  0x27   : > { %p1130_p6 = por %p1129_p5, %p1128_p4 }
  0x29   : > { %p1131_p7 = pnand %p1130_p6, %p1124_p2 }
  0xf7   : > { %v252_v12 = vpop.f32.mrb[0].mxu0 }
  0xf8   : > { %v907_v13 = vadd.f32 -1e+08, %v252_v12  ;;  %v962_v14 = vpop.f32.mrb[1].mxu0 }
  0xf9   : > { %v255_v15 = vpop.f32.mrb[2].mxu0  ;;  %v924_v14 = vadd.s32 4294967290, %v1342_v11 }
  0xfa   : > { %v264_v16 = vsel %vm261_vm4, %v907_v13, %v252_v12  ;;  %v908_v17 = vadd.f32 -1e+08, %v255_v15  ;;  %v963_v18 = vpop.f32.mrb[3].mxu0 }
  0xfb   : > { %374 = vperm.xlu1 %1067, %v264_v16   ;;  %361 = vperm.xlu0 %1066, %v264_v16   ;;  %vm454_vm5 = vcmp.eq.s32.totalorder %v1336_v8, %v924_v14 }
  0xfc   : > { %v1346_v20 = vsel %vm261_vm4, %v908_v17, %v255_v15  ;;  %vm440_vm4 = vcmp.eq.s32.totalorder %v1336_v8, %v922_v9  ;;  %v926_v15 = vadd.s32 4294967289, %v1342_v11 }
  0xfd   : > { %v971_v21 = vpack.c.bf16 %v1346_v20, %v264_v16 }
  0xff   : > { %1069 = vset.pattern.permute.xlu1 %v1221_v22  ;;  %1068 = vset.pattern.permute.xlu0 %v1222_v23 }
 0x100   : > { %972 = vmatprep.subr.bf16.mxu1 %v971_v21  ;;  %402 = vperm.xlu1 %1069, %v264_v16  }
 0x101   : > { %388 = vperm.xlu0 %1068, %v264_v16   ;;  %974 = vmatpush3.bf16.msra.mxu1 %v971_v21 }
 0x104   : > { %969 = vmatmul.mubr.msk.f32.vlgmr.msra.gmra.mrb[0].mxu1 %vm277_vm3, %v910_v24  ;;  %1070 = vset.pattern.permute.xlu1 %v1223_v25 }
 0x105   : > { %1071 = vset.pattern.permute.xlu0 %v1224_v26  ;;  %416 = vperm.xlu1 %1070, %v264_v16  }
 0x106   : > { %430 = vperm.xlu0 %1071, %v264_v16  }
 0x109   : > { %1072 = vset.pattern.permute.xlu1 %v1225_v27 }
 0x10a   : > { %1074 = vset.pattern.permute.xlu0 %v1220_v6  ;;  %444 = vperm.xlu1 %1072, %v264_v16  }
 0x10b   : > { %366 = vperm.xlu0 %1074, %v1346_v20  }
 0x10e   : > { %1073 = vset.pattern.permute.xlu1 %v1226_v28 }
 0x10f   : > { %1077 = vset.pattern.permute.xlu0 %v1221_v22  ;;  %458 = vperm.xlu1 %1073, %v264_v16  }
 0x110   : > { %406 = vperm.xlu0 %1077, %v1346_v20  }
 0x113   : > { %1075 = vset.pattern.permute.xlu1 %v1219_v5 }
 0x114   : > { %1080 = vset.pattern.permute.xlu0 %v1225_v27  ;;  %378 = vperm.xlu1 %1075, %v1346_v20  }
 0x115   : > { %448 = vperm.xlu0 %1080, %v1346_v20  }
 0x118   : > { %1076 = vset.pattern.permute.xlu1 %v1222_v23 }
 0x119   : > { %1082 = vset.pattern.permute.xlu0 %v1227_v29  ;;  %392 = vperm.xlu1 %1076, %v1346_v20  }
 0x11a   : > { %476 = vperm.xlu0 %1082, %v1346_v20  }
 0x11d   : > { %1078 = vset.pattern.permute.xlu1 %v1223_v25 }
 0x11e   : > { %1085 = vset.pattern.permute.xlu0 %v1228_v30  ;;  %420 = vperm.xlu1 %1078, %v1346_v20  }
 0x11f   : > { %516 = vperm.xlu0 %1085, %v1346_v20  }
 0x122   : > { %1079 = vset.pattern.permute.xlu1 %v1224_v26 }
 0x123   : > { %1088 = vset.pattern.permute.xlu0 %v1229_v31  ;;  %434 = vperm.xlu1 %1079, %v1346_v20  }
 0x124   : > { %558 = vperm.xlu0 %1088, %v1346_v20  }
 0x127   : > { %1081 = vset.pattern.permute.xlu1 %v1226_v28 }
 0x128   : > { %462 = vperm.xlu1 %1081, %v1346_v20   ;;  %1090 = vset.pattern.permute.xlu0 %v1230_v32 }
 0x12c   : > { %1083 = vset.pattern.permute.xlu1 %v1231_v33 }
 0x12d   : > { %488 = vperm.xlu1 %1083, %v1346_v20  }
 0x131   : > { %1084 = vset.pattern.permute.xlu1 %v1232_v34 }
 0x132   : > { %502 = vperm.xlu1 %1084, %v1346_v20  }
 0x136   : > { %1086 = vset.pattern.permute.xlu1 %v1233_v35 }
 0x137   : > { %530 = vperm.xlu1 %1086, %v1346_v20  }
 0x13b   : > { %1087 = vset.pattern.permute.xlu1 %v1234_v36 }
 0x13c   : > { %544 = vperm.xlu1 %1087, %v1346_v20  }
 0x140   : > { %1089 = vset.pattern.permute.xlu1 %v1230_v32 }
 0x141   : > { %572 = vperm.xlu1 %1089, %v1346_v20  }
 0x145   : > { %1091 = vset.pattern.permute.xlu1 %v1229_v31 }
 0x17a   : > { %v375_v38 = vpop.permute.xlu1 %374  ;;  %v362_v39 = vpop.permute.xlu0 %361 }
 0x17b   : > { %v371_v42 = vsel %vm369_vm6, %v362_v39, 0.0 }
 0x17c   : > { %v385_v45 = vsel %vm383_vm7, %v375_v38, %v371_v42  ;;  %vm468_vm7 = vcmp.eq.s32.totalorder %v1336_v8, %v926_v15  ;;  %v931_v38 = vadd.s32 4294967286, %v1342_v11  ;;  %v933_v42 = vadd.s32 4294967285, %v1342_v11 }
 0x17d   : > { %v661_v15 = vadd.s32 7, %v1334_v7 }
 0x17f   : > { %v403_v44 = vpop.permute.xlu1 %402 }
 0x180   : > { %v389_v46 = vpop.permute.xlu0 %388 }
 0x181   : > { %v399_v47 = vsel %vm397_vm8, %v389_v46, %v385_v45  ;;  %vm494_vm8 = vcmp.eq.s32.totalorder %v1336_v8, %v929_v19 }
 0x182   : > { %v413_v48 = vsel %vm411_vm9, %v403_v44, %v399_v47  ;;  %vm508_vm9 = vcmp.eq.s32.totalorder %v1336_v8, %v931_v38  ;;  %v937_v47 = vadd.s32 4294967283, %v1342_v11  ;;  %v662_v38 = vadd.s32 7, %v1342_v11 }
 0x184   : > { %v417_v51 = vpop.permute.xlu1 %416 }
 0x185   : > { %v427_v52 = vsel %vm425_vm10, %v417_v51, %v413_v48  ;;  %v431_v53 = vpop.permute.xlu0 %430  ;;  %vm522_vm10 = vcmp.eq.s32.totalorder %v1336_v8, %v933_v42 }
 0x186   : > { %v441_v55 = vsel %vm439_vm11, %v431_v53, %v427_v52  ;;  %vm536_vm11 = vcmp.eq.s32.totalorder %v1336_v8, %v935_v43  ;;  %v715_v43 = vadd.s32 11, %v1334_v7 }
 0x189   : > { %v445_v56 = vpop.permute.xlu1 %444 }
 0x18a   : > { %v455_v57 = vsel %vm453_vm12, %v445_v56, %v441_v55  ;;  %v367_v63 = vpop.permute.xlu0 %366  ;;  %vm593_vm12 = vcmp.eq.s32.totalorder %v1336_v8, %v591_v60 }
 0x18b   : > { %v372_v1 = vsel %vm370_vm14, %v367_v63, 0.0 }
 0x18e   : > { %v459_v58 = vpop.permute.xlu1 %458 }
 0x18f   : > { %v1408_v59 = vsel %vm467_vm13, %v459_v58, %v455_v57  ;;  %v407_v6 = vpop.permute.xlu0 %406  ;;  %vm607_vm13 = vcmp.eq.s32.totalorder %v1336_v8, %v605_v61  ;;  %v758_v61 = vadd.s32 14, %v1342_v11 }
 0x193   : > { %v379_v62 = vpop.permute.xlu1 %378 }
 0x194   : > { %v386_v3 = vsel %vm384_vm15, %v379_v62, %v372_v1  ;;  %v449_v18 = vpop.permute.xlu0 %448  ;;  %v939_v62 = vadd.s32 4294967282, %v1342_v11  ;;  %v592_v1 = vadd.s32 2, %v1342_v11 }
 0x196   : > { %vm564_vm15 = vcmp.eq.s32.totalorder %v1336_v8, %v939_v62 }
 0x198   : > { %v393_v4 = vpop.permute.xlu1 %392 }
 0x199   : > { %v400_v5 = vsel %vm398_vm0, %v393_v4, %v386_v3  ;;  %v477_v37 = vpop.permute.xlu0 %476  ;;  %v619_v3 = vadd.s32 4, %v1334_v7  ;;  %v633_v4 = vadd.s32 5, %v1334_v7  ;;  %vm578_vm0 = vcmp.eq.s32.totalorder %v1336_v8, %v941_v0 }
 0x19a   : > { %v414_v12 = vsel %vm412_vm1, %v407_v6, %v400_v5  ;;  %v606_v5 = vadd.s32 3, %v1342_v11  ;;  %v647_v6 = vadd.s32 6, %v1334_v7  ;;  %vm594_vm1 = vcmp.eq.s32.totalorder %v1336_v8, %v592_v1 }
 0x19d   : > { %v421_v10 = vpop.permute.xlu1 %420 }
 0x19e   : > { %v428_v13 = vsel %vm426_vm2, %v421_v10, %v414_v12  ;;  %v517_v46 = vpop.permute.xlu0 %516  ;;  %v620_v12 = vadd.s32 4, %v1342_v11  ;;  %vm621_vm2 = vcmp.eq.s32.totalorder %v1336_v8, %v619_v3 }
 0x1a2   : > { %v435_v16 = vpop.permute.xlu1 %434 }
 0x1a3   : > { %v442_v17 = vsel %vm440_vm4, %v435_v16, %v428_v13  ;;  %vm635_vm4 = vcmp.eq.s32.totalorder %v1336_v8, %v633_v4 }
 0x1a4   : > { %v456_v21 = vsel %vm454_vm5, %v449_v18, %v442_v17  ;;  %vm608_vm5 = vcmp.eq.s32.totalorder %v1336_v8, %v606_v5  ;;  %v634_v18 = vadd.s32 5, %v1342_v11 }
 0x1a7   : > { %v463_v20 = vpop.permute.xlu1 %462 }
 0x1a8   : > { %v470_v24 = vsel %vm468_vm7, %v463_v20, %v456_v21  ;;  %vm649_vm7 = vcmp.eq.s32.totalorder %v1336_v8, %v647_v6  ;;  %v687_v20 = vadd.s32 9, %v1334_v7  ;;  %v648_v21 = vadd.s32 6, %v1342_v11 }
 0x1a9   : > { %v482_v40 = vsel %vm369_vm6, %v477_v37, %v470_v24  ;;  %vm550_vm6 = vcmp.eq.s32.totalorder %v1336_v8, %v937_v47  ;;  %v729_v47 = vadd.s32 12, %v1334_v7 }
 0x1ac   : > { %v489_v39 = vpop.permute.xlu1 %488 }
 0x1ad   : > { %v496_v41 = vsel %vm494_vm8, %v489_v39, %v482_v40  ;;  %vm622_vm8 = vcmp.eq.s32.totalorder %v1336_v8, %v620_v12 }
 0x1b1   : > { %v503_v44 = vpop.permute.xlu1 %502 }
 0x1b2   : > { %v510_v45 = vsel %vm508_vm9, %v503_v44, %v496_v41  ;;  %vm663_vm9 = vcmp.eq.s32.totalorder %v1336_v8, %v661_v15  ;;  %v701_v41 = vadd.s32 10, %v1334_v7  ;;  %v675_v44 = vadd.s32 8, %v1342_v11 }
 0x1b3   : > { %v524_v49 = vsel %vm522_vm10, %v517_v46, %v510_v45  ;;  %vm636_vm10 = vcmp.eq.s32.totalorder %v1336_v8, %v634_v18 }
 0x1b6   : > { %v531_v48 = vpop.permute.xlu1 %530 }
 0x1b7   : > { %v538_v50 = vsel %vm536_vm11, %v531_v48, %v524_v49  ;;  %vm689_vm11 = vcmp.eq.s32.totalorder %v1336_v8, %v687_v20  ;;  %v688_v48 = vadd.s32 9, %v1342_v11 }
 0x1bb   : > { %v545_v51 = vpop.permute.xlu1 %544 }
 0x1bc   : > { %v1442_v52 = vsel %vm550_vm6, %v545_v51, %v538_v50  ;;  %vm650_vm6 = vcmp.eq.s32.totalorder %v1336_v8, %v648_v21 }
 0x1d7   : > { %v970_v53 = vpop.f32.mrb[0].mxu1 }
 0x1d8   : > { %602 = vperm.xlu1 %1091, %v970_v53   ;;  %588 = vperm.xlu0 %1090, %v970_v53   ;;  %v350_v54 = vpop.f32.mrb[1].mxu1 }
 0x1dc   : > { %1092 = vset.pattern.permute.xlu1 %v1234_v36  ;;  %1093 = vset.pattern.permute.xlu0 %v1233_v35 }
 0x1dd   : > { %616 = vperm.xlu1 %1092, %v970_v53   ;;  %630 = vperm.xlu0 %1093, %v970_v53  }
 0x1e1   : > { %1094 = vset.pattern.permute.xlu1 %v1228_v30  ;;  %1096 = vset.pattern.permute.xlu0 %v1231_v33 }
 0x1e2   : > { %644 = vperm.xlu1 %1094, %v970_v53   ;;  %672 = vperm.xlu0 %1096, %v970_v53  }
 0x1e6   : > { %1095 = vset.pattern.permute.xlu1 %v1232_v34  ;;  %1099 = vset.pattern.permute.xlu0 %v1225_v27 }
 0x1e7   : > { %658 = vperm.xlu1 %1095, %v970_v53   ;;  %712 = vperm.xlu0 %1099, %v970_v53  }
 0x1eb   : > { %1097 = vset.pattern.permute.xlu1 %v1227_v29  ;;  %1104 = vset.pattern.permute.xlu0 %v1234_v36 }
 0x1ec   : > { %684 = vperm.xlu1 %1097, %v970_v53   ;;  %612 = vperm.xlu0 %1104, %v350_v54  }
 0x1f0   : > { %1098 = vset.pattern.permute.xlu1 %v1226_v28  ;;  %1107 = vset.pattern.permute.xlu0 %v1232_v34 }
 0x1f1   : > { %698 = vperm.xlu1 %1098, %v970_v53   ;;  %654 = vperm.xlu0 %1107, %v350_v54  }
 0x1f5   : > { %1100 = vset.pattern.permute.xlu1 %v1224_v26  ;;  %1110 = vset.pattern.permute.xlu0 %v1226_v28 }
 0x1f6   : > { %726 = vperm.xlu1 %1100, %v970_v53   ;;  %694 = vperm.xlu0 %1110, %v350_v54  }
 0x1fa   : > { %1101 = vset.pattern.permute.xlu1 %v1223_v25  ;;  %1113 = vset.pattern.permute.xlu0 %v1223_v25  ;;  %v573_v25 = vpop.permute.xlu1 %572 }
 0x1fb   : > { %740 = vperm.xlu1 %1101, %v970_v53   ;;  %736 = vperm.xlu0 %1113, %v350_v54  }
 0x1ff   : > { %1102 = vset.pattern.permute.xlu1 %v1230_v32  ;;  %1115 = vset.pattern.permute.xlu0 %v1221_v22 }
 0x200   : > { %754 = vperm.xlu0 %1115, %v970_v53   ;;  %583 = vperm.xlu1 %1102, %v350_v54  }
 0x204   : > { %1103 = vset.pattern.permute.xlu1 %v1229_v31  ;;  %1117 = vset.pattern.permute.xlu0 %v1222_v23 }
 0x205   : > { %598 = vperm.xlu1 %1103, %v350_v54  }
 0x209   : > { %1105 = vset.pattern.permute.xlu1 %v1233_v35 }
 0x20a   : > { %626 = vperm.xlu1 %1105, %v350_v54  }
 0x20e   : > { %1106 = vset.pattern.permute.xlu1 %v1228_v30 }
 0x20f   : > { %640 = vperm.xlu1 %1106, %v350_v54  }
 0x213   : > { %1108 = vset.pattern.permute.xlu1 %v1231_v33  ;;  %v559_v33 = vpop.permute.xlu0 %558 }
 0x214   : > { %668 = vperm.xlu1 %1108, %v350_v54   ;;  %v566_v14 = vsel %vm564_vm15, %v559_v33, %v1442_v52  ;;  %v702_v52 = vadd.s32 10, %v1342_v11  ;;  %vm717_vm15 = vcmp.eq.s32.totalorder %v1336_v8, %v715_v43 }
 0x215   : > { %v580_v16 = vsel %vm578_vm0, %v573_v25, %v566_v14  ;;  %v743_v25 = vadd.s32 13, %v1334_v7  ;;  %vm676_vm0 = vcmp.eq.s32.totalorder %v1336_v8, %v675_v44 }
 0x218   : > { %1109 = vset.pattern.permute.xlu1 %v1227_v29 }
 0x219   : > { %680 = vperm.xlu1 %1109, %v350_v54  }
 0x21d   : > { %1111 = vset.pattern.permute.xlu1 %v1225_v27 }
 0x21e   : > { %708 = vperm.xlu1 %1111, %v350_v54  }
 0x222   : > { %1112 = vset.pattern.permute.xlu1 %v1224_v26 }
 0x223   : > { %722 = vperm.xlu1 %1112, %v350_v54  }
 0x227   : > { %1114 = vset.pattern.permute.xlu1 %v1221_v22 }
 0x228   : > { %750 = vperm.xlu1 %1114, %v350_v54  }
 0x22c   : > { %1116 = vset.pattern.permute.xlu1 %v1222_v23 }
 0x22d   : > { %764 = vperm.xlu1 %1116, %v350_v54  }
 0x231   : > { %768 = vperm.xlu1 %1116, %v970_v53  }
 0x257   : > { %v603_v28 = vpop.permute.xlu1 %602  ;;  %v589_v34 = vpop.permute.xlu0 %588 }
 0x25c   : > { %v617_v30 = vpop.permute.xlu1 %616  ;;  %v631_v35 = vpop.permute.xlu0 %630 }
 0x261   : > { %v1470_v31 = vpop.permute.xlu1 %644  ;;  %v1482_v55 = vpop.permute.xlu0 %672 }
 0x266   : > { %v1472_v29 = vpop.permute.xlu1 %658  ;;  %v1484_v58 = vpop.permute.xlu0 %712 }
 0x26b   : > { %v1474_v32 = vpop.permute.xlu1 %684  ;;  %v613_v2 = vpop.permute.xlu0 %612 }
 0x270   : > { %v1476_v27 = vpop.permute.xlu1 %698  ;;  %v655_v17 = vpop.permute.xlu0 %654 }
 0x275   : > { %v1478_v26 = vpop.permute.xlu1 %726  ;;  %v695_v45 = vpop.permute.xlu0 %694 }
 0x27a   : > { %v1480_v22 = vpop.permute.xlu1 %740 }
 0x27f   : > { %v584_v23 = vpop.permute.xlu1 %583 }
 0x280   : > { %v595_v9 = vsel %vm593_vm12, %v584_v23, %v1408_v59  ;;  %v596_v59 = vsel %vm594_vm1, %v589_v34, %v580_v16  ;;  %vm664_vm12 = vcmp.eq.s32.totalorder %v1336_v8, %v662_v38  ;;  %vm690_vm1 = vcmp.eq.s32.totalorder %v1336_v8, %v688_v48 }
 0x281   : > { %v610_v40 = vsel %vm608_vm5, %v603_v28, %v596_v59  ;;  %v771_v34 = vadd.s32 15, %v1334_v7  ;;  %v730_v23 = vadd.s32 12, %v1342_v11 }
 0x282   : > { %v624_v42 = vsel %vm622_vm8, %v617_v30, %v610_v40  ;;  %v757_v30 = vadd.s32 14, %v1334_v7 }
 0x283   : > { %v638_v51 = vsel %vm636_vm10, %v631_v35, %v624_v42  ;;  %vm773_vm8 = vcmp.eq.s32.totalorder %v1336_v8, %v771_v34 }
 0x284   : > { %v599_v36 = vpop.permute.xlu1 %598  ;;  %v652_v54 = vsel %vm650_vm6, %v1470_v31, %v638_v51  ;;  %v716_v31 = vadd.s32 11, %v1342_v11  ;;  %vm759_vm5 = vcmp.eq.s32.totalorder %v1336_v8, %v757_v30 }
 0x285   : > { %v609_v13 = vsel %vm607_vm13, %v599_v36, %v595_v9  ;;  %vm703_vm13 = vcmp.eq.s32.totalorder %v1336_v8, %v701_v41  ;;  %v666_v28 = vsel %vm664_vm12, %v1472_v29, %v652_v54  ;;  %v737_v29 = vpop.permute.xlu0 %736 }
 0x286   : > { %v623_v19 = vsel %vm621_vm2, %v613_v2, %v609_v13  ;;  %vm704_vm2 = vcmp.eq.s32.totalorder %v1336_v8, %v702_v52 }
 0x289   : > { %v627_v56 = vpop.permute.xlu1 %626 }
 0x28a   : > { %v637_v24 = vsel %vm635_vm4, %v627_v56, %v623_v19  ;;  %v678_v56 = vsel %vm676_vm0, %v1482_v55, %v666_v28  ;;  %vm745_vm4 = vcmp.eq.s32.totalorder %v1336_v8, %v743_v25  ;;  %v772_v55 = vadd.s32 15, %v1342_v11 }
 0x28b   : > { %v692_v7 = vsel %vm690_vm1, %v1474_v32, %v678_v56 }
 0x28c   : > { %v706_v62 = vsel %vm704_vm2, %v1476_v27, %v692_v7  ;;  %v755_v27 = vpop.permute.xlu0 %754  ;;  %vm774_vm6 = vcmp.eq.s32.totalorder %v1336_v8, %v772_v55 }
 0x28e   : > { %v641_v57 = vpop.permute.xlu1 %640 }
 0x28f   : > { %v651_v39 = vsel %vm649_vm7, %v641_v57, %v637_v24  ;;  %v744_v57 = vadd.s32 13, %v1342_v11  ;;  %vm718_vm7 = vcmp.eq.s32.totalorder %v1336_v8, %v716_v31 }
 0x290   : > { %v665_v46 = vsel %vm663_vm9, %v655_v17, %v651_v39  ;;  %vm732_vm9 = vcmp.eq.s32.totalorder %v1336_v8, %v730_v23  ;;  %v720_v1 = vsel %vm718_vm7, %v1484_v58, %v706_v62 }
 0x291   : > { %vm746_vm10 = vcmp.eq.s32.totalorder %v1336_v8, %v744_v57  ;;  %v734_v11 = vsel %vm732_vm9, %v1478_v26, %v720_v1 }
 0x292   : > { %v748_v3 = vsel %vm746_vm10, %v1480_v22, %v734_v11 }
 0x293   : > { %v669_v63 = vpop.permute.xlu1 %668 }
 0x294   : > { %v677_v49 = vsel %vm370_vm14, %v669_v63, %v665_v46  ;;  %vm731_vm14 = vcmp.eq.s32.totalorder %v1336_v8, %v729_v47 }
 0x298   : > { %v681_v10 = vpop.permute.xlu1 %680 }
 0x299   : > { %v691_v53 = vsel %vm689_vm11, %v681_v10, %v677_v49  ;;  %vm760_vm11 = vcmp.eq.s32.totalorder %v1336_v8, %v758_v61 }
 0x29a   : > { %v705_v33 = vsel %vm703_vm13, %v695_v45, %v691_v53  ;;  %v762_v58 = vsel %vm760_vm11, %v755_v27, %v748_v3 }
 0x29d   : > { %v709_v37 = vpop.permute.xlu1 %708 }
 0x29e   : > { %v719_v35 = vsel %vm717_vm15, %v709_v37, %v705_v33 }
 0x2a2   : > { %v723_v50 = vpop.permute.xlu1 %722 }
 0x2a3   : > { %v733_v60 = vsel %vm731_vm14, %v723_v50, %v719_v35 }
 0x2a4   : > { %v747_v63 = vsel %vm745_vm4, %v737_v29, %v733_v60 }
 0x2a7   : > { %v751_v36 = vpop.permute.xlu1 %750 }
 0x2a8   : > { %v761_v0 = vsel %vm759_vm5, %v751_v36, %v747_v63 }
 0x2ac   : > { %v765_v32 = vpop.permute.xlu1 %764 }
 0x2ad   : > { %v775_v2 = vsel %vm773_vm8, %v765_v32, %v761_v0 }
 0x2ae   : > { %777 = vst.msk [vmem:[%s175_s13] sm:$0xff] %vm277_vm3, %v775_v2 }
 0x2b0   : > { %v769_v4 = vpop.permute.xlu1 %768 }
 0x2b1   : > { %v776_v5 = vsel %vm774_vm6, %v769_v4, %v762_v58 }
 0x2b2   : > { %778 = vst.msk [vmem:[%s175_s13 + $0x8] sm:$0xff] %vm277_vm3, %v776_v5 }
 0x2b3   : > { %1134 = shalt.err (!%p1131_p7)
}
 0x2b4   : > { %s1135_s24 = scalar_lea.hbm %s1572_s6, 256  ;;  %s1139_s28 = scalar_lea.hbm %s1631_s2, 2048 }
 0x2b5   : > { %p1136_p9 = scmp.ne.s32.totalorder %s1572_s6, %s1135_s24  ;;  %p1140_p12 = scmp.lt.u32.totalorder %s1572_s6, %s1631_s2 }
 0x2b6   : > { %p1141_p13 = scmp.lt.u32.totalorder %s1139_s28, %s1135_s24  ;;  %p1143_p1 = scmp.lt.u32.totalorder %s1135_s24, %s1572_s6 }
 0x2b7   : > { %p1137_p10 = pnand %p1136_p9, %p1304_p3 }
 0x2b8   : > { %p1142_p0 = por %p1141_p13, %p1140_p12 }
 0x2b9   : > { %p1138_p11 = pneg %p1137_p10 }
 0x2ba   : > { %p1144_p2 = por %p1143_p1, %p1142_p0 }
 0x2bc   : > { %p1145_p4 = pnand %p1144_p2, %p1138_p11 }
 0x2be   : > { %1148 = shalt.err (!%p1145_p4)
}
 0x2bf   : > { %s1236_s13 = smov 128   ;;  %s1237_s3 = smov 8  }
 0x2c0   : > { %975 = dma.vmem_to_hbm [thread:$0]  (%p1304_p3), %s1567_s30, 256, %s1572_s6, %s1577_s7, %s1236_s13, %s1236_s13, %s1237_s3  }
 0x2c1 PF: > { %p981_p5 = scmp.ge.s32.totalorder %s1215_s16, 2  ;;  %s810_s4 = sand.u32 1, %s1187_s9  }
 0x2c2   : > { %s811_s5 = scalar_lea.sflag [#allocation3], %s810_s4 }
 0x2c3   : > { %p978_p6 = pnand %p981_p5, %p1313_p8 }
 0x2c5   : > { %1182 = dma.done.wait (!%p978_p6), %s811_s5, 256  }
 0x2c6   : > { %1184 = vsyncadd (!%p978_p6), %s811_s5, 4294967040  ;;  %s15_s16 = sadd.s32 1, %s1215_s16   ;;  %s1634_s9 = smov %s1191_s10 }
 0x2c7   : > { %p12_p7 = scmp.ge.s32.totalorder %s15_s16, 10   ;;  %s1635_s10 = smov %s1195_s11 }
 0x2c8   : > { %s1636_s11 = smov %s1322_s27  ;;  %s1637_s12 = smov %s1207_s14 }
 0x2c9   : > { %s1638_s13 = smov %s1211_s15  ;;  %s1639_s14 = smov %s1642_s19 }
 0x2ca   : > { %s1640_s15 = smov %s1646_s20  ;;  %14 = sbr.rel (!%p12_p7) target bundleno = 5 (0x5), region = 66 }
 0x2d1   :  { %816 = vsyncpa [#allocation3], 1 }
 0x2d2   :  { %818 = vsyncpa [#allocation3 + $0x1], 1 }

</bundles_post_ra>
